<compile_context>
chip_gen: v5e
topology: v5e:2x2
jax: 0.10.0
libtpu: 0.0.40
codegen_flags: <defaults>
</compile_context>

<pallas_src>
import math

import jax
import jax.numpy as jnp
from jax import lax
from jax.experimental import pallas as pl
from jax.experimental.pallas import tpu as pltpu


def _round_up(n, m):
    return ((n + m - 1) // m) * m


# --------------------------------------------------------------------------
# Kernel
# --------------------------------------------------------------------------

def _embed_kernel(x_ref, w_ref, o_ref):
    # x_ref: (TM, K), w_ref: (N, K), o_ref: (TM, N); contract over K (no transpose op).
    o_ref[...] = lax.dot_general(
        x_ref[...], w_ref[...],
        dimension_numbers=(((1,), (1,)), ((), ())),
        preferred_element_type=jnp.float32,
    ).astype(o_ref.dtype)


# --------------------------------------------------------------------------
# Wrapper
# --------------------------------------------------------------------------

_VMEM_BUDGET = 12 * 1024 * 1024       # tile-sizing budget: safe under v5e's 16 MiB scoped default
_VMEM_LIMIT = 32 * 1024 * 1024        # explicit scoped-VMEM limit (<< physical on every chip)


def _pick_tm(m_rows, k, n, itemsize):
    """Pick the token-tile size: big blocks (amortize per-grid-step overhead) under a
    VMEM budget that counts the 128-lane padding of the skinny x tile, capped so large
    problems still produce >= ~4 tiles (v7x megacore)."""
    lane_k = _round_up(k, 128)
    lane_n = _round_up(n, 128)
    w_bytes = 2 * _round_up(n, 8) * lane_k * itemsize            # resident weight (x2, conservative)
    per_row = 2 * (lane_k + lane_n) * itemsize                   # double-buffered x + out rows
    tm = max(256, ((_VMEM_BUDGET - w_bytes) // per_row) // 256 * 256)
    tm = min(tm, max(256, _round_up(pl.cdiv(m_rows, 4), 256)))   # keep >= ~4 tiles when possible
    tm = min(tm, _round_up(m_rows, 8))                           # never much bigger than the problem
    if tm >= m_rows:
        tm = m_rows                                              # single full-array block (no masking)
    return tm


def _embed_matmul(x2d, w_nk):
    """out[m, n] = sum_k x2d[m, k] * w_nk[n, k], tiled over m. Single HBM pass per tensor."""
    m_rows, k = x2d.shape
    n, kw = w_nk.shape
    assert kw == k
    itemsize = x2d.dtype.itemsize
    tm = _pick_tm(m_rows, k, n, itemsize)

    return pl.pallas_call(
        _embed_kernel,
        out_shape=jax.ShapeDtypeStruct((m_rows, n), x2d.dtype),
        grid_spec=pltpu.PrefetchScalarGridSpec(
            num_scalar_prefetch=0,
            grid=(pl.cdiv(m_rows, tm),),
            in_specs=[
                pl.BlockSpec((tm, k), lambda i: (i, 0)),   # token tile
                pl.BlockSpec((n, k), lambda i: (0, 0)),    # weight, stays resident
            ],
            out_specs=pl.BlockSpec((tm, n), lambda i: (i, 0)),
        ),
        compiler_params=pltpu.CompilerParams(
            dimension_semantics=("parallel",),             # shard tiles across TCs (v7x)
            vmem_limit_bytes=_VMEM_LIMIT,
        ),
        cost_estimate=pl.CostEstimate(
            flops=2 * m_rows * k * n,
            transcendentals=0,
            bytes_accessed=itemsize * (m_rows * k + n * k + m_rows * n),
        ),
    )(x2d, w_nk)


def token_embedding(x, weight):
    """x: [B, L, c_in], weight: [d_model, c_in] (Conv1d weight squeezed on the k axis).

    Returns [B, L, d_model]; identical semantics to TokenEmbedding.forward.
    """
    B, L, C = x.shape
    D, Cw = weight.shape
    assert Cw == C
    M = B * L
    x2d = x.reshape(M, C)

    use_packed = (D < 128) and (128 % D == 0) and (M % (128 // D) == 0)
    if use_packed:
        # Pack r tokens per row -> exactly 128-lane output stores (no masked vst),
        # all reshapes are free row-major reinterpretations of the same HBM buffers.
        r = 128 // D
        eye = jnp.eye(r, dtype=weight.dtype)
        # w_pack[(j, d), (i, c)] = (i == j) * W[d, c]
        w_pack = jnp.einsum("ij,dc->jdic", eye, weight).reshape(r * D, r * C)
        x_pack = x2d.reshape(M // r, r * C)
        out2d = _embed_matmul(x_pack, w_pack).reshape(M, D)
    else:
        # Direct path: lane-dense when D % 128 == 0, masked-store fallback otherwise.
        out2d = _embed_matmul(x2d, weight)

    return out2d.reshape(B, L, D)


def init_conv_weight(key, c_in, d_model):
    """Kaiming normal, mode='fan_in', nonlinearity='leaky_relu' (a=0.01 default),
    matching nn.init.kaiming_normal_ on a Conv1d weight of shape (d_model, c_in, 1)."""
    a = 0.01
    gain = math.sqrt(2.0 / (1.0 + a * a))
    fan_in = c_in * 1  # kernel_size = 1
    std = gain / math.sqrt(fan_in)
    return jax.random.normal(key, (d_model, c_in), dtype=jnp.float32) * std


if __name__ == "__main__":
    key = jax.random.PRNGKey(0)
    kx, kw, kw2, kx3, kw3 = jax.random.split(key, 5)

    # 1) Small d_model dividing 128 -> packed 128-lane path.
    B, L, c_in, d_model = 2, 8, 4, 32
    x = jax.random.normal(kx, (B, L, c_in), dtype=jnp.float32)
    w = init_conv_weight(kw, c_in, d_model)
    out = jax.block_until_ready(token_embedding(x, w))
    ref = jnp.einsum("blc,dc->bld", x, w)
    assert out.shape == (B, L, d_model)
    assert jnp.allclose(out, ref, atol=1e-5, rtol=1e-5)

    # 2) d_model % 128 == 0 -> direct lane-dense path.
    d_model2 = 128
    w2 = init_conv_weight(kw2, c_in, d_model2)
    out2 = jax.block_until_ready(token_embedding(x, w2))
    ref2 = jnp.einsum("blc,dc->bld", x, w2)
    assert out2.shape == (B, L, d_model2)
    assert jnp.allclose(out2, ref2, atol=1e-5, rtol=1e-5)

    # 3) Token count not a multiple of 128//d_model -> direct (masked-store) fallback.
    B3, L3 = 1, 7
    x3 = jax.random.normal(kx3, (B3, L3, c_in), dtype=jnp.float32)
    w3 = init_conv_weight(kw3, c_in, d_model)
    out3 = jax.block_until_ready(token_embedding(x3, w3))
    ref3 = jnp.einsum("blc,dc->bld", x3, w3)
    assert out3.shape == (B3, L3, d_model)
    assert jnp.allclose(out3, ref3, atol=1e-5, rtol=1e-5)

    print("KERNEL_OK")
</pallas_src>

<mosaic_0001>
module attributes {stable_mosaic.version = 11 : i64} {
  func.func @_embed_kernel(%arg0: i32, %arg1: memref<4x16xf32, #tpu.memory_space<vmem>>, %arg2: memref<128x16xf32, #tpu.memory_space<vmem>>, %arg3: memref<4x128xf32, #tpu.memory_space<vmem>>) attributes {dimension_semantics = [#tpu.dimension_semantics<parallel>], iteration_bounds = array<i64: 1>, scalar_prefetch = 0 : i64, scratch_operands = 0 : i64, tpu.core_type = #tpu.core_type<tc>, window_params = [{transform_indices = @transform_0, window_bounds = array<i64: 4, 16>}, {pipeline_mode = #tpu.pipeline_mode<synchronous>, transform_indices = @transform_1, window_bounds = array<i64: 128, 16>}, {transform_indices = @transform_2, window_bounds = array<i64: 4, 128>}]} {
    %c0 = arith.constant 0 : index
    %c0_0 = arith.constant 0 : index
    %0 = vector.load %arg1[%c0, %c0_0] : memref<4x16xf32, #tpu.memory_space<vmem>>, vector<4x16xf32>
    %c0_1 = arith.constant 0 : index
    %c0_2 = arith.constant 0 : index
    %1 = vector.load %arg2[%c0_1, %c0_2] : memref<128x16xf32, #tpu.memory_space<vmem>>, vector<128x16xf32>
    %cst = arith.constant dense<0.000000e+00> : vector<4x128xf32>
    %2 = tpu.matmul %0, %1, %cst {dimension_numbers = #tpu.dot_dimension_numbers<[1], [1], [0], [0], [0, 0, 1, 0], [], []>} : vector<4x16xf32>, vector<128x16xf32>, vector<4x128xf32> -> vector<4x128xf32>
    %c0_3 = arith.constant 0 : index
    %c0_4 = arith.constant 0 : index
    %3 = vector.load %arg3[%c0_3, %c0_4] : memref<4x128xf32, #tpu.memory_space<vmem>>, vector<4x128xf32>
    tpu.vector_store %arg3[%c0_3, %c0_4], %2 {strides = array<i32>} : memref<4x128xf32, #tpu.memory_space<vmem>>, vector<4x128xf32>,
    return
  }
  func.func @transform_0(%arg0: i32) -> (i32, i32) {
    %c0_i32 = arith.constant 0 : i32
    %c0_i32_0 = arith.constant 0 : i32
    return %arg0, %c0_i32 : i32, i32
  }
  func.func @transform_1(%arg0: i32) -> (i32, i32) {
    %c0_i32 = arith.constant 0 : i32
    %c0_i32_0 = arith.constant 0 : i32
    %c0_i32_1 = arith.constant 0 : i32
    return %c0_i32, %c0_i32_0 : i32, i32
  }
  func.func @transform_2(%arg0: i32) -> (i32, i32) {
    %c0_i32 = arith.constant 0 : i32
    %c0_i32_0 = arith.constant 0 : i32
    return %arg0, %c0_i32 : i32, i32
  }
}

</mosaic_0001>

<bundles_post_ra>
// kernel: tpu_custom_call.1
= control target key start
LH: loop header
LB: loop body
LE: loop exit
PB: predicated region body
PF: predicated region fallthrough
CT: control target
= control target key end

     0   :  { %vm29_vm0 = vcmask 130048   ;;  %s249_s0 = inlined_call_operand.vmem [shape: f32[4,16], index: 0, kind: input, shape index: {}]   ;;  %s250_s1 = inlined_call_operand.vmem [shape: f32[128,16], index: 1, kind: input, shape index: {}]   ;;  %s251_s2 = inlined_call_operand.hbm [shape: f32[4,128], index: 2, kind: output, shape index: {}]  }
   0x1   :  { %v28_v0 = vld [vmem:[%s250_s1 + $0x78] sm:$0xff]  ;;  %v27_v1 = vld [vmem:[%s250_s1 + $0x70] sm:$0xff] }
   0x2   :  { %118 = vmatpush.xpose.msk.msra.mxu0 %vm29_vm0, %v28_v0 }
   0x3   :  { %7 = vsyncpa [#allocation3], 0  ;;  %v26_v2 = vld [vmem:[%s250_s1 + $0x68] sm:$0xff]  ;;  %v25_v3 = vld [vmem:[%s250_s1 + $0x60] sm:$0xff]  ;;  %s162_s15 = smov [#allocation2]   ;;  %s109_s19 = sshll.u32 %s251_s2, 4  ;;  %s110_s19 = int_to_ptr.hbm [resolvable:$true] %s109_s19 }
   0x4   :  { %v24_v4 = vld [vmem:[%s250_s1 + $0x58] sm:$0xff]  ;;  %v23_v5 = vld [vmem:[%s250_s1 + $0x50] sm:$0xff]  ;;  %v22_v6 = vld [vmem:[%s250_s1 + $0x48] sm:$0xff]  ;;  %s107_s16 = sshll.u32 %s162_s15, 4  ;;  %s108_s16 = int_to_ptr.vmem [resolvable:$true] %s107_s16 }
   0x5   :  { %v21_v7 = vld [vmem:[%s250_s1 + $0x40] sm:$0xff]  ;;  %v20_v8 = vld [vmem:[%s250_s1 + $0x38] sm:$0xff]  ;;  %v19_v9 = vld [vmem:[%s250_s1 + $0x30] sm:$0xff] }
   0x6   :  { %119 = vmatpush.xpose.msk.msra.mxu0 %vm29_vm0, %v27_v1  ;;  %v18_v10 = vld [vmem:[%s250_s1 + $0x28] sm:$0xff]  ;;  %v17_v11 = vld [vmem:[%s250_s1 + $0x20] sm:$0xff]  ;;  %v16_v12 = vld [vmem:[%s250_s1 + $0x18] sm:$0xff] }
   0x7   :  { %v15_v13 = vld [vmem:[%s250_s1 + $0x10] sm:$0xff]  ;;  %v14_v14 = vld [vmem:[%s250_s1 + $0x8] sm:$0xff]  ;;  %v13_v15 = vld [vmem:[%s250_s1] sm:$0xff] }
   0x8   :  { %v12_v16 = vld [vmem:[%s249_s0] sm:$0xf] }
   0xa   :  { %120 = vmatpush.xpose.msk.msra.mxu0 %vm29_vm0, %v26_v2 }
   0xe   :  { %121 = vmatpush.xpose.msk.msra.mxu0 %vm29_vm0, %v25_v3 }
  0x12   :  { %122 = vmatpush.xpose.msk.msra.mxu0 %vm29_vm0, %v24_v4 }
  0x16   :  { %123 = vmatpush.xpose.msk.msra.mxu0 %vm29_vm0, %v23_v5 }
  0x1a   :  { %124 = vmatpush.xpose.msk.msra.mxu0 %vm29_vm0, %v22_v6 }
  0x1e   :  { %125 = vmatpush.xpose.msk.msra.mxu0 %vm29_vm0, %v21_v7 }
  0x22   :  { %126 = vmatpush.xpose.msk.msra.mxu0 %vm29_vm0, %v20_v8 }
  0x26   :  { %127 = vmatpush.xpose.msk.msra.mxu0 %vm29_vm0, %v19_v9 }
  0x2a   :  { %128 = vmatpush.xpose.msk.msra.mxu0 %vm29_vm0, %v18_v10 }
  0x2e   :  { %129 = vmatpush.xpose.msk.msra.mxu0 %vm29_vm0, %v17_v11 }
  0x32   :  { %130 = vmatpush.xpose.msk.msra.mxu0 %vm29_vm0, %v16_v12 }
  0x36   :  { %131 = vmatpush.xpose.msk.msra.mxu0 %vm29_vm0, %v15_v13 }
  0x3a   :  { %132 = vmatpush.xpose.msk.msra.mxu0 %vm29_vm0, %v14_v14 }
  0x3e   :  { %133 = vmatpush.xpose.msk.msra.mxu0 %vm29_vm0, %v13_v15 }
  0x41   :  { %134 = vmatmul.msk.f32.vlgmr.msra.gmra.mxu0 %vm29_vm0, %v12_v16 }
  0xbe   :  { %v98_v17 = vpop.f32.mrf.mxu0 }
  0xbf   :  { %101 = vst [vmem:[#allocation2] sm:$0xf] %v98_v17 }
  0xc0   :  { %112 = dma.vmem_to_hbm [thread:$0]  %s108_s16, 64, %s110_s19, [#allocation3]  }
  0xc1   :  { %160 = dma.done.wait [#allocation3], 64  }
  0xc2   :  { %161 = vsyncadd [#allocation3], 4294967232 }
  0xc3   :  { %117 = vsyncpa [#allocation3], 1 }

</bundles_post_ra>
